<compile_context>
chip_gen: v5e
topology: v5e:2x2
jax: 0.10.0
libtpu: 0.0.40
codegen_flags: <defaults>
</compile_context>

<pallas_src>
import functools

import jax
import jax.numpy as jnp
from jax.experimental import pallas as pl
from jax.experimental.pallas import tpu as pltpu


def _round_up(x: int, m: int) -> int:
    return ((x + m - 1) // m) * m


def _padded_tile_bytes(rows: int, cols: int, dtype) -> int:
    """VMEM bytes of a (rows, cols) tile after (sublane, lane) layout padding."""
    dt = jnp.dtype(dtype)
    sublane = {4: 8, 2: 16, 1: 32}.get(dt.itemsize, 8)
    return (_round_up(max(rows, 1), sublane)
            * _round_up(max(cols, 1), 128)
            * dt.itemsize)


# ------------------------------------------------------------------ kernel ----------
def fn_net_kernel(x_ref, w0_ref, b0_ref, w1_ref, b1_ref, w2_ref, b2_ref, o_ref):
    """One batch tile: 3 matmuls (f32 MXU accumulation), bias-add + tanh in compute dtype."""
    cdt = w0_ref.dtype
    x = x_ref[...].astype(cdt)                       # in-kernel cast (x is f32 in HBM)

    h = jnp.dot(x, w0_ref[...], preferred_element_type=jnp.float32).astype(cdt)
    h = jnp.tanh(h + b0_ref[...])

    h = jnp.dot(h, w1_ref[...], preferred_element_type=jnp.float32).astype(cdt)
    h = jnp.tanh(h + b1_ref[...])

    o = jnp.dot(h, w2_ref[...], preferred_element_type=jnp.float32).astype(cdt)
    o_ref[...] = (o + b2_ref[...]).astype(o_ref.dtype)


# ------------------------------------------------------------------ params ----------
def prepare_params(w0, b0, w1, b1, w2, b2, compute_dtype=jnp.float32):
    """One-time prep (outside the forward): cast to compute dtype + lane-pad layer 3."""
    compute_dtype = jnp.dtype(compute_dtype)
    hid = w0.shape[1]
    out_dim = w2.shape[1]
    out_pad = _round_up(max(out_dim, 1), 128)
    if out_pad != out_dim:
        w2 = jnp.zeros((hid, out_pad), w2.dtype).at[:, :out_dim].set(w2)
        b2 = jnp.zeros((b2.shape[0], out_pad), b2.dtype).at[:, :out_dim].set(b2)
    params = tuple(p.astype(compute_dtype) for p in (w0, b0, w1, b1, w2, b2))
    return params, out_dim


# ------------------------------------------------------------------ tiling ----------
def _choose_batch_tile(batch_pad, in_dim, hid, out_pad, x_dtype, compute_dtype,
                       single_buffer, budget_bytes=14 * 1024 * 1024):
    """Largest batch tile (multiple of 8, divisor of batch_pad) that fits the VMEM budget.

    Uses layout-padded tile sizes and counts pipeline buffering of *every* operand.
    Returns (tile, vmem_limit_bytes).
    """
    nbuf_res = 1 if single_buffer else 2
    resident = nbuf_res * (
        _padded_tile_bytes(in_dim, hid, compute_dtype)
        + _padded_tile_bytes(hid, hid, compute_dtype)
        + _padded_tile_bytes(hid, out_pad, compute_dtype)
        + 2 * _padded_tile_bytes(1, hid, compute_dtype)
        + _padded_tile_bytes(1, out_pad, compute_dtype))

    def per_tile(tb):
        return (2 * _padded_tile_bytes(tb, in_dim, x_dtype)           # x tile, 2 pipeline bufs
                + 2 * _padded_tile_bytes(tb, out_pad, compute_dtype)  # out tile, 2 pipeline bufs
                + _padded_tile_bytes(tb, in_dim, compute_dtype)       # in-kernel x cast
                + 2 * _padded_tile_bytes(tb, hid, jnp.float32)        # f32 dot accumulators
                + 2 * _padded_tile_bytes(tb, hid, compute_dtype)      # activations
                + _padded_tile_bytes(tb, out_pad, jnp.float32))       # final f32 accumulator

    avail = max(budget_bytes - resident, per_tile(8))
    tb_max = 8
    for cand in range(8, 1024 + 1, 8):
        if per_tile(cand) <= avail:
            tb_max = cand
        else:
            break

    # v7x megacore: keep >= 2 grid steps whenever the batch allows it.
    cap = tb_max
    if batch_pad >= 16:
        cap = min(cap, batch_pad // 2)
    cap = max(min(cap, batch_pad), 8)

    tb = 8
    for cand in range(8, cap + 1, 8):
        if batch_pad % cand == 0:
            tb = cand

    footprint = resident + per_tile(tb)
    vmem_limit = max(16 * 1024 * 1024, int(footprint * 1.2))
    return tb, vmem_limit


# ------------------------------------------------------------ feature probe ---------
def _probe_copy_kernel(x_ref, o_ref):
    o_ref[...] = x_ref[...]


@functools.lru_cache(maxsize=None)
def _single_buffer_supported() -> bool:
    """Does this Pallas build accept pipeline_mode=pl.Buffered(1)? Probed once."""
    try:
        spec = pl.BlockSpec((8, 128), lambda i: (0, 0), pipeline_mode=pl.Buffered(1))
        fn = pl.pallas_call(
            _probe_copy_kernel,
            out_shape=jax.ShapeDtypeStruct((8, 128), jnp.float32),
            grid=(2,),
            in_specs=[spec],
            out_specs=pl.BlockSpec((8, 128), lambda i: (0, 0)),
        )
        jax.block_until_ready(fn(jnp.zeros((8, 128), jnp.float32)))
        return True
    except Exception:
        return False


# ----------------------------------------------------------------- forward ----------
@functools.partial(jax.jit, static_argnames=("out_dim", "single_buffer"))
def fn_net_forward(x, params, *, out_dim, single_buffer=False):
    """x: [B, input_dim] f32; params from prepare_params(). Returns [B, out_dim] f32."""
    w0, b0, w1, b1, w2, b2 = params
    compute_dtype = w0.dtype
    B, in_dim = x.shape
    hid = w0.shape[1]
    out_pad = w2.shape[1]

    # Pad batch only to the sublane multiple; no copy when B is already aligned.
    batch_pad = _round_up(max(B, 1), 8)
    if batch_pad != B:
        x = jnp.zeros((batch_pad, in_dim), x.dtype).at[:B].set(x)

    tb, vmem_limit = _choose_batch_tile(
        batch_pad, in_dim, hid, out_pad, x.dtype, compute_dtype, single_buffer)
    grid = (batch_pad // tb,)

    def resident(shape):
        # Weights/biases: constant block index -> VMEM-resident across the batch grid.
        index_map = lambda i, _s=shape: (0,) * len(_s)
        if single_buffer:
            return pl.BlockSpec(shape, index_map, pipeline_mode=pl.Buffered(1))
        return pl.BlockSpec(shape, index_map)

    out = pl.pallas_call(
        fn_net_kernel,
        out_shape=jax.ShapeDtypeStruct((batch_pad, out_pad), compute_dtype),
        grid=grid,
        in_specs=[
            pl.BlockSpec((tb, in_dim), lambda i: (i, 0)),     # x tile (pipelined)
            resident(w0.shape), resident(b0.shape),
            resident(w1.shape), resident(b1.shape),
            resident(w2.shape), resident(b2.shape),
        ],
        out_specs=pl.BlockSpec((tb, out_pad), lambda i: (i, 0)),
        compiler_params=pltpu.CompilerParams(
            dimension_semantics=("parallel",),   # shard batch grid across TCs on v7x
            vmem_limit_bytes=vmem_limit,
        ),
    )(x, w0, b0, w1, b1, w2, b2)

    # Tiny op: drop lane padding and return f32 like the PyTorch module.
    return out[:B, :out_dim].astype(jnp.float32)


# ------------------------------------------------------------------ helpers ---------
def init_params(key, input_dim, output_dim, hid_size):
    """Deterministic synthetic init (uniform like PyTorch's default Linear init)."""
    ks = jax.random.split(key, 6)

    def uinit(k, shape, fan_in):
        bound = 1.0 / jnp.sqrt(fan_in)
        return jax.random.uniform(k, shape, jnp.float32, -bound, bound)

    w0 = uinit(ks[0], (input_dim, hid_size), input_dim)
    b0 = uinit(ks[1], (1, hid_size), input_dim)
    w1 = uinit(ks[2], (hid_size, hid_size), hid_size)
    b1 = uinit(ks[3], (1, hid_size), hid_size)
    w2 = uinit(ks[4], (hid_size, output_dim), hid_size)
    b2 = uinit(ks[5], (1, output_dim), hid_size)
    return w0, b0, w1, b1, w2, b2


def _reference(x, w0, b0, w1, b1, w2, b2):
    h = jnp.tanh(x @ w0 + b0)
    h = jnp.tanh(h @ w1 + b1)
    return h @ w2 + b2


if __name__ == "__main__":
    key = jax.random.PRNGKey(0)
    single_buffer = _single_buffer_supported()

    # --- small-shape check (FN_Net(input_dim=4, output_dim=3, hid_size=32)), f32 ----
    input_dim, output_dim, hid_size, batch = 4, 3, 32, 8
    k_x, k_p, k_x2, k_p2 = jax.random.split(key, 4)
    x = jax.random.normal(k_x, (batch, input_dim), jnp.float32)
    raw = init_params(k_p, input_dim, output_dim, hid_size)

    params, out_dim = prepare_params(*raw, compute_dtype=jnp.float32)
    out = fn_net_forward(x, params, out_dim=out_dim, single_buffer=single_buffer)
    out = jax.block_until_ready(out)
    ref = _reference(x, *raw)
    assert out.shape == (batch, output_dim)
    assert jnp.allclose(out, ref, atol=1e-5, rtol=1e-5), "f32 mismatch vs JAX reference"

    # --- larger gridded check: multi-step batch grid, bf16 matmuls + activations ----
    in2, out2, hid2, b2n = 4, 3, 128, 2048
    x2 = jax.random.normal(k_x2, (b2n, in2), jnp.float32)
    raw2 = init_params(k_p2, in2, out2, hid2)

    params2, out_dim2 = prepare_params(*raw2, compute_dtype=jnp.bfloat16)
    out_bf16 = fn_net_forward(x2, params2, out_dim=out_dim2, single_buffer=single_buffer)
    out_bf16 = jax.block_until_ready(out_bf16)
    ref2 = _reference(x2, *raw2)
    assert out_bf16.shape == (b2n, out2)
    assert jnp.allclose(out_bf16, ref2, atol=5e-2, rtol=5e-2), "bf16 mismatch vs JAX reference"

    print("KERNEL_OK")
</pallas_src>

<mosaic_0001>
module attributes {stable_mosaic.version = 11 : i64} {
  func.func @_probe_copy_kernel(%arg0: i32, %arg1: memref<8x128xf32, #tpu.memory_space<vmem>>, %arg2: memref<8x128xf32, #tpu.memory_space<vmem>>) attributes {dimension_semantics = [#tpu.dimension_semantics<arbitrary>], iteration_bounds = array<i64: 2>, scalar_prefetch = 0 : i64, scratch_operands = 0 : i64, tpu.core_type = #tpu.core_type<tc>, window_params = [{pipeline_mode = #tpu.pipeline_mode<synchronous>, transform_indices = @transform_0, window_bounds = array<i64: 8, 128>}, {pipeline_mode = #tpu.pipeline_mode<synchronous>, transform_indices = @transform_1, window_bounds = array<i64: 8, 128>}]} {
    %c0 = arith.constant 0 : index
    %c0_0 = arith.constant 0 : index
    %0 = vector.load %arg1[%c0, %c0_0] : memref<8x128xf32, #tpu.memory_space<vmem>>, vector<8x128xf32>
    %c0_1 = arith.constant 0 : index
    %c0_2 = arith.constant 0 : index
    %1 = vector.load %arg2[%c0_1, %c0_2] : memref<8x128xf32, #tpu.memory_space<vmem>>, vector<8x128xf32>
    tpu.vector_store %arg2[%c0_1, %c0_2], %0 {strides = array<i32>} : memref<8x128xf32, #tpu.memory_space<vmem>>, vector<8x128xf32>,
    return
  }
  func.func @transform_0(%arg0: i32) -> (i32, i32) {
    %c0_i32 = arith.constant 0 : i32
    %c0_i32_0 = arith.constant 0 : i32
    %c0_i32_1 = arith.constant 0 : i32
    return %c0_i32, %c0_i32_0 : i32, i32
  }
  func.func @transform_1(%arg0: i32) -> (i32, i32) {
    %c0_i32 = arith.constant 0 : i32
    %c0_i32_0 = arith.constant 0 : i32
    %c0_i32_1 = arith.constant 0 : i32
    return %c0_i32, %c0_i32_0 : i32, i32
  }
}

module attributes {stable_mosaic.version = 11 : i64} {
  func.func @fn_net_kernel(%arg0: i32, %arg1: memref<8x4xf32, #tpu.memory_space<vmem>>, %arg2: memref<4x32xf32, #tpu.memory_space<vmem>>, %arg3: memref<1x32xf32, #tpu.memory_space<vmem>>, %arg4: memref<32x32xf32, #tpu.memory_space<vmem>>, %arg5: memref<1x32xf32, #tpu.memory_space<vmem>>, %arg6: memref<32x128xf32, #tpu.memory_space<vmem>>, %arg7: memref<1x128xf32, #tpu.memory_space<vmem>>, %arg8: memref<8x128xf32, #tpu.memory_space<vmem>>) attributes {dimension_semantics = [#tpu.dimension_semantics<parallel>], iteration_bounds = array<i64: 1>, scalar_prefetch = 0 : i64, scratch_operands = 0 : i64, tpu.core_type = #tpu.core_type<tc>, window_params = [{transform_indices = @transform_0, window_bounds = array<i64: 8, 4>}, {pipeline_mode = #tpu.pipeline_mode<synchronous>, transform_indices = @transform_1, window_bounds = array<i64: 4, 32>}, {pipeline_mode = #tpu.pipeline_mode<synchronous>, transform_indices = @transform_2, window_bounds = array<i64: 1, 32>}, {pipeline_mode = #tpu.pipeline_mode<synchronous>, transform_indices = @transform_3, window_bounds = array<i64: 32, 32>}, {pipeline_mode = #tpu.pipeline_mode<synchronous>, transform_indices = @transform_4, window_bounds = array<i64: 1, 32>}, {pipeline_mode = #tpu.pipeline_mode<synchronous>, transform_indices = @transform_5, window_bounds = array<i64: 32, 128>}, {pipeline_mode = #tpu.pipeline_mode<synchronous>, transform_indices = @transform_6, window_bounds = array<i64: 1, 128>}, {transform_indices = @transform_7, window_bounds = array<i64: 8, 128>}]} {
    %c0 = arith.constant 0 : index
    %c0_0 = arith.constant 0 : index
    %0 = vector.load %arg1[%c0, %c0_0] : memref<8x4xf32, #tpu.memory_space<vmem>>, vector<8x4xf32>
    %c0_1 = arith.constant 0 : index
    %c0_2 = arith.constant 0 : index
    %1 = vector.load %arg2[%c0_1, %c0_2] : memref<4x32xf32, #tpu.memory_space<vmem>>, vector<4x32xf32>
    %cst = arith.constant dense<0.000000e+00> : vector<8x32xf32>
    %2 = tpu.matmul %0, %1, %cst {dimension_numbers = #tpu.dot_dimension_numbers<[1], [0], [0], [1], [0, 0, 1, 1], [], []>} : vector<8x4xf32>, vector<4x32xf32>, vector<8x32xf32> -> vector<8x32xf32>
    %c0_3 = arith.constant 0 : index
    %c0_4 = arith.constant 0 : index
    %3 = vector.load %arg3[%c0_3, %c0_4] : memref<1x32xf32, #tpu.memory_space<vmem>>, vector<1x32xf32>
    %4 = vector.broadcast %3 : vector<1x32xf32> to vector<8x32xf32>
    %5 = arith.addf %2, %4 : vector<8x32xf32>
    %6 = math.tanh %5 : vector<8x32xf32>
    %c0_5 = arith.constant 0 : index
    %c0_6 = arith.constant 0 : index
    %7 = vector.load %arg4[%c0_5, %c0_6] : memref<32x32xf32, #tpu.memory_space<vmem>>, vector<32x32xf32>
    %cst_7 = arith.constant dense<0.000000e+00> : vector<8x32xf32>
    %8 = tpu.matmul %6, %7, %cst_7 {dimension_numbers = #tpu.dot_dimension_numbers<[1], [0], [0], [1], [0, 0, 1, 1], [], []>} : vector<8x32xf32>, vector<32x32xf32>, vector<8x32xf32> -> vector<8x32xf32>
    %c0_8 = arith.constant 0 : index
    %c0_9 = arith.constant 0 : index
    %9 = vector.load %arg5[%c0_8, %c0_9] : memref<1x32xf32, #tpu.memory_space<vmem>>, vector<1x32xf32>
    %10 = vector.broadcast %9 : vector<1x32xf32> to vector<8x32xf32>
    %11 = arith.addf %8, %10 : vector<8x32xf32>
    %12 = math.tanh %11 : vector<8x32xf32>
    %c0_10 = arith.constant 0 : index
    %c0_11 = arith.constant 0 : index
    %13 = vector.load %arg6[%c0_10, %c0_11] : memref<32x128xf32, #tpu.memory_space<vmem>>, vector<32x128xf32>
    %cst_12 = arith.constant dense<0.000000e+00> : vector<8x128xf32>
    %14 = tpu.matmul %12, %13, %cst_12 {dimension_numbers = #tpu.dot_dimension_numbers<[1], [0], [0], [1], [0, 0, 1, 1], [], []>} : vector<8x32xf32>, vector<32x128xf32>, vector<8x128xf32> -> vector<8x128xf32>
    %c0_13 = arith.constant 0 : index
    %c0_14 = arith.constant 0 : index
    %15 = vector.load %arg7[%c0_13, %c0_14] : memref<1x128xf32, #tpu.memory_space<vmem>>, vector<1x128xf32>
    %16 = vector.broadcast %15 : vector<1x128xf32> to vector<8x128xf32>
    %17 = arith.addf %14, %16 : vector<8x128xf32>
    %c0_15 = arith.constant 0 : index
    %c0_16 = arith.constant 0 : index
    %18 = vector.load %arg8[%c0_15, %c0_16] : memref<8x128xf32, #tpu.memory_space<vmem>>, vector<8x128xf32>
    tpu.vector_store %arg8[%c0_15, %c0_16], %17 {strides = array<i32>} : memref<8x128xf32, #tpu.memory_space<vmem>>, vector<8x128xf32>,
    return
  }
  func.func @transform_0(%arg0: i32) -> (i32, i32) {
    %c0_i32 = arith.constant 0 : i32
    %c0_i32_0 = arith.constant 0 : i32
    return %arg0, %c0_i32 : i32, i32
  }
  func.func @transform_1(%arg0: i32) -> (i32, i32) {
    %c0_i32 = arith.constant 0 : i32
    %c0_i32_0 = arith.constant 0 : i32
    %c0_i32_1 = arith.constant 0 : i32
    return %c0_i32, %c0_i32_0 : i32, i32
  }
  func.func @transform_2(%arg0: i32) -> (i32, i32) {
    %c0_i32 = arith.constant 0 : i32
    %c0_i32_0 = arith.constant 0 : i32
    %c0_i32_1 = arith.constant 0 : i32
    return %c0_i32, %c0_i32_0 : i32, i32
  }
  func.func @transform_3(%arg0: i32) -> (i32, i32) {
    %c0_i32 = arith.constant 0 : i32
    %c0_i32_0 = arith.constant 0 : i32
    %c0_i32_1 = arith.constant 0 : i32
    return %c0_i32, %c0_i32_0 : i32, i32
  }
  func.func @transform_4(%arg0: i32) -> (i32, i32) {
    %c0_i32 = arith.constant 0 : i32
    %c0_i32_0 = arith.constant 0 : i32
    %c0_i32_1 = arith.constant 0 : i32
    return %c0_i32, %c0_i32_0 : i32, i32
  }
  func.func @transform_5(%arg0: i32) -> (i32, i32) {
    %c0_i32 = arith.constant 0 : i32
    %c0_i32_0 = arith.constant 0 : i32
    %c0_i32_1 = arith.constant 0 : i32
    return %c0_i32, %c0_i32_0 : i32, i32
  }
  func.func @transform_6(%arg0: i32) -> (i32, i32) {
    %c0_i32 = arith.constant 0 : i32
    %c0_i32_0 = arith.constant 0 : i32
    %c0_i32_1 = arith.constant 0 : i32
    return %c0_i32, %c0_i32_0 : i32, i32
  }
  func.func @transform_7(%arg0: i32) -> (i32, i32) {
    %c0_i32 = arith.constant 0 : i32
    %c0_i32_0 = arith.constant 0 : i32
    return %arg0, %c0_i32 : i32, i32
  }
}

</mosaic_0001>

<bundles_post_ra>
// kernel: tpu_custom_call.1
= control target key start
LH: loop header
LB: loop body
LE: loop exit
PB: predicated region body
PF: predicated region fallthrough
CT: control target
= control target key end

     0   :  { %6 = vsyncpa [#allocation3], 0  ;;  %s286_s0 = inlined_call_operand.hbm [shape: f32[8,128], index: 0, kind: input, shape index: {}]   ;;  %s287_s1 = inlined_call_operand.hbm [shape: f32[8,128], index: 1, kind: output, shape index: {}]  }
   0x1   :  { %7 = vsyncpa [#allocation4], 0  ;;  %s269_s6 = smov 0  }
   0x2 LB: > { %s148_s7 = sadd.s32 4294967295, %s255_s6   ;;  %p149_p0 = scmp.ge.s32.totalorder %s255_s6, 1  ;;  %s255_s6 = sphi %s269_s6, %s13_s6  }
   0x3   : > { %p60_p1 = scmp.lt.s32.totalorder %s255_s6, 3  ;;  %s72_s10 = sshll.u32 %s286_s0, 4  ;;  %s73_s10 = int_to_ptr.hbm [resolvable:$true] %s72_s10 }
   0x4   : > { %p169_p3 = scmp.eq.s32.totalorder %s148_s7, 0  ;;  %s257_s11 = smov [#allocation2]  }
   0x5   : > { %p61_p2 = pnand %p149_p0, %p60_p1  ;;  %s74_s12 = sshll.u32 %s257_s11, 4  ;;  %s75_s12 = int_to_ptr.vmem [resolvable:$true] %s74_s12 }
   0x7   : > { %p165_p4 = pneg %p61_p2  ;;  %87 = sbr.rel (%p61_p2) target bundleno = 19 (0x13), region = 24 }
   0x9   : > { %p166_p5 = pnand %p169_p3, %p165_p4 }
   0xb   : > { %168 = dma.hbm_to_vmem [thread:$0]  (!%p166_p5), %s73_s10, 128, %s75_s12, [#allocation3]  }
   0xc   : > { %246 = dma.done.wait (%p169_p3), [#allocation3], 128  }
   0xd   : > { %248 = vsyncadd (%p169_p3), [#allocation3], 4294967168  ;;  %s258_s13 = smov [#allocation5]   ;;  %s108_s17 = sshll.u32 %s287_s1, 4  ;;  %v98_v0 = vld [vmem:[#allocation2] sm:$0xff]  ;;  %s109_s17 = int_to_ptr.hbm [resolvable:$true] %s108_s17 }
   0xe   : > { %s106_s14 = sshll.u32 %s258_s13, 4  ;;  %p171_p6 = scmp.eq.s32.totalorder %s148_s7, 1  ;;  %99 = vst [vmem:[#allocation5] sm:$0xff] %v98_v0  ;;  %s107_s14 = int_to_ptr.vmem [resolvable:$true] %s106_s14 }
  0x10   : > { %162 = dma.vmem_to_hbm [thread:$0]  (%p171_p6), %s107_s14, 128, %s109_s17, [#allocation4]  }
  0x11   : > { %250 = dma.done.wait (%p171_p6), [#allocation4], 128  }
  0x12   : > { %252 = vsyncadd (%p171_p6), [#allocation4], 4294967168 }
  0x13 PF: > { %s13_s6 = sadd.s32 1, %s255_s6  }
  0x14   : > { %p10_p7 = scmp.ge.s32.totalorder %s13_s6, 4  }
  0x16   :  { %12 = sbr.rel (!%p10_p7) target bundleno = 2 (0x2), region = 53 }
  0x1b   :  { %122 = vsyncpa [#allocation3], 1 }
  0x1c   :  { %124 = vsyncpa [#allocation3 + $0x1], 1 }
  0x1d   :  { %125 = vsyncpa [#allocation4], 1 }
  0x1e   :  { %127 = vsyncpa [#allocation4 + $0x1], 1 }

// kernel: fn_net_forward.1
= control target key start
LH: loop header
LB: loop body
LE: loop exit
PB: predicated region body
PF: predicated region fallthrough
CT: control target
= control target key end

     0   :  { %12 = vsyncpa [#allocation3], 0  ;;  %s301_s0 = inlined_call_operand.vmem [shape: f32[8,4], index: 0, kind: input, shape index: {}]   ;;  %s302_s1 = inlined_call_operand.vmem [shape: f32[4,32], index: 1, kind: input, shape index: {}]   ;;  %s303_s2 = inlined_call_operand.vmem [shape: f32[1,32], index: 2, kind: input, shape index: {}]   ;;  %s304_s3 = inlined_call_operand.hbm [shape: f32[32,32], index: 3, kind: input, shape index: {}]   ;;  %s305_s4 = inlined_call_operand.vmem [shape: f32[1,32], index: 4, kind: input, shape index: {}]   ;;  %s306_s5 = inlined_call_operand.hbm [shape: f32[32,128], index: 5, kind: input, shape index: {}]   ;;  %s307_s6 = inlined_call_operand.vmem [shape: f32[1,128], index: 6, kind: input, shape index: {}]   ;;  %s308_s7 = inlined_call_operand.vmem [shape: f32[8,128], index: 7, kind: output, shape index: {}]  }
   0x1   :  { %s24_s26 = sshll.u32 %s304_s3, 4  ;;  %s25_s26 = int_to_ptr.hbm [resolvable:$true] %s24_s26 }
   0x2   :  { %13 = vsyncpa [#allocation5], 0  ;;  %s231_s27 = smov [#allocation2]   ;;  %s39_s8 = sshll.u32 %s306_s5, 4  ;;  %s40_s8 = int_to_ptr.hbm [resolvable:$true] %s39_s8 }
   0x3   :  { %s26_s28 = sshll.u32 %s231_s27, 4  ;;  %s232_s9 = smov 128   ;;  %s27_s28 = int_to_ptr.vmem [resolvable:$true] %s26_s28 }
   0x4   :  { %s233_s10 = smov 8   ;;  %s234_s11 = smov [#allocation4]  }
   0x5   :  { %32 = dma.hbm_to_vmem [thread:$0]  %s25_s26, 512, %s27_s28, [#allocation3], %s232_s9, %s232_s9, %s233_s10  }
   0x6   :  { %s41_s12 = sshll.u32 %s234_s11, 4  ;;  %s42_s12 = int_to_ptr.vmem [resolvable:$true] %s41_s12 }
   0x7   :  { %47 = dma.hbm_to_vmem [thread:$0]  %s40_s8, 512, %s42_s12, [#allocation5], %s232_s9, %s232_s9, %s233_s10  }
   0x8   :  { %227 = dma.done.wait [#allocation3], 512  }
   0x9   :  { %228 = vsyncadd [#allocation3], 4294966784 }
   0xa   :  { %229 = dma.done.wait [#allocation5], 512  }
   0xb   :  { %230 = vsyncadd [#allocation5], 4294966784  ;;  %vm68_vm0 = vcmask 1043456   ;;  %vm64_vm1 = vcmask 31744   ;;  %v59_v0 = vld [vmem:[%s302_s1] sm:$0xf] }
   0xc   :  { %v58_v1 = vld [vmem:[%s301_s0] sm:$0xff]  ;;  %164 = vmatpush.msk.msra.mxu0 %vm68_vm0, %v59_v0  ;;  %v96_v2 = vld [vmem:[#allocation2 + $0x18] sm:$0xff]  ;;  %v95_v3 = vld [vmem:[#allocation2 + $0x10] sm:$0xff]  ;;  %vm101_vm2 = vcmask 261120  }
   0xd   :  { %165 = vmatmul.msk.f32.vlgmr.msra.gmra.mxu0 %vm64_vm1, %v58_v1  ;;  %117 = vmatpush.msra.mxu1 %v96_v2  ;;  %v94_v4 = vld [vmem:[#allocation2 + $0x8] sm:$0xff]  ;;  %v93_v5 = vld [vmem:[#allocation2] sm:$0xff]  ;;  %v129_v10 = vld [vmem:[#allocation4 + $0x18] sm:$0xff] }
   0xe   :  { %v172_v6 = vld [vmem:[%s303_s2] ss:$0 sm:$0xff]  ;;  %149 = vmatpush.msra.mxu2 %v129_v10  ;;  %v128_v11 = vld [vmem:[#allocation4 + $0x10] sm:$0xff]  ;;  %v127_v12 = vld [vmem:[#allocation4 + $0x8] sm:$0xff] }
   0xf   :  { %118 = vmatpush.msra.mxu1 %v95_v3  ;;  %v126_v13 = vld [vmem:[#allocation4] sm:$0xff] }
  0x10   :  { %150 = vmatpush.msra.mxu2 %v128_v11  ;;  %v173_v14 = vld [vmem:[%s305_s4] ss:$0 sm:$0xff] }
  0x11   :  { %119 = vmatpush.msra.mxu1 %v94_v4  ;;  %v174_v18 = vld [vmem:[%s307_s6] ss:$0 sm:$0xff] }
  0x12   :  { %151 = vmatpush.msra.mxu2 %v127_v12 }
  0x13   :  { %120 = vmatpush.msra.mxu1 %v93_v5 }
  0x14   :  { %152 = vmatpush.msra.mxu2 %v126_v13 }
  0x8a   :  { %v89_v7 = vpop.f32.mrf.mxu0 }
  0x8b   :  { %v90_v8 = vadd.f32 %v172_v6, %v89_v7 }
  0x8d   :  { %175 = vtanh.f32 %v90_v8 }
  0x93   :  { %v176_v9 = vpop.eup %175 }
  0x94   :  { %166 = vmatmul.msk.f32.vlgmr.msra.gmra.mxu1 %vm101_vm2, %v176_v9 }
 0x111   :  { %v122_v15 = vpop.f32.mrf.mxu1 }
 0x112   :  { %v123_v16 = vadd.f32 %v173_v14, %v122_v15 }
 0x114   :  { %177 = vtanh.f32 %v123_v16 }
 0x11a   :  { %v178_v17 = vpop.eup %177 }
 0x11b   :  { %167 = vmatmul.msk.f32.vlgmr.msra.gmra.mxu2 %vm101_vm2, %v178_v17 }
 0x19e   :  { %v154_v19 = vpop.f32.mrf.mxu2 }
 0x19f   :  { %v155_v20 = vadd.f32 %v174_v18, %v154_v19 }
 0x1a1   :  { %157 = vst [vmem:[%s308_s7] sm:$0xff] %v155_v20 }
 0x1a2   :  { %162 = vsyncpa [#allocation3], 1 }
 0x1a3   :  { %163 = vsyncpa [#allocation5], 1 }

</bundles_post_ra>
